<compile_context>
chip_gen: v5e
topology: v5e:2x2
jax: 0.10.0
libtpu: 0.0.40
codegen_flags: <defaults>
</compile_context>

<pallas_src>
import functools

import jax
import jax.numpy as jnp
from jax import lax
from jax.experimental import pallas as pl
from jax.experimental.pallas import tpu as pltpu


def _residual_dw_bn_kernel(x_ref, p_ref, m_ref, o_ref, *, W, HWp):
    # x_ref:  (1, CB, HWp)  one batch element / channel block, spatial on lanes
    # p_ref:  (CB, 10)      cols 0..8: depthwise taps (t = kh*3+kw) with BN
    #                       scale folded in and +1.0 folded into the center
    #                       tap (residual); col 9: fused BN bias
    # m_ref:  (8, HWp)      per-tap edge-validity masks (1.0 valid / 0.0 pad),
    #                       rows ordered over the 8 non-center taps
    # o_ref:  (1, CB, HWp)  x + BN(dwconv(x))
    x = x_ref[0]                                  # (CB, HWp) f32
    p = p_ref[...]                                # (CB, 10)
    masks = m_ref[...]                            # (8, HWp)

    # Center tap (includes the folded residual +1): unshifted, unmasked.
    acc = x * p[:, 4:5]

    idx = 0
    for dh in (-1, 0, 1):
        for dw in (-1, 0, 1):
            if dh == 0 and dw == 0:
                continue
            t = (dh + 1) * 3 + (dw + 1)           # tap index kh*3 + kw
            s = dh * W + dw                       # flat-spatial shift
            # shifted[q] = x[(q + s) mod HWp]; invalid (edge/pad) positions
            # are zeroed by the precomputed mask.
            shifted = pltpu.roll(x, shift=(-s) % HWp, axis=1)
            acc = acc + (shifted * masks[idx:idx + 1, :]) * p[:, t:t + 1]
            idx += 1

    # fused BN bias (residual already folded into the center tap)
    o_ref[0] = (acc + p[:, 9:10]).astype(o_ref.dtype)

    # TODO(synk): training-mode stochastic depth (drop > 0: per-sample
    # Bernoulli mask scaled by 1/(1-drop)) not implemented; eval path only.


def _pick_channel_block(C, HWp, dtype_bytes=4, target_bytes=1 << 21):
    """Largest multiple-of-8 divisor of C whose (CB, HWp) block is <= ~2 MB.

    Falls back to the full C when C has no multiple-of-8 divisor (keeps the
    (8,128) BlockSpec rule satisfied via the equals-full-dim escape hatch).
    """
    if C < 8:
        return C
    cands = [d for d in range(8, C + 1, 8) if C % d == 0]
    if not cands:
        return C
    fitting = [d for d in cands if d * HWp * dtype_bytes <= target_bytes]
    return max(fitting) if fitting else min(cands)


def residual_dw_bn(x_nchw, w_dw, bn_gamma, bn_beta, bn_mean, bn_var, eps=1e-5):
    """x_nchw: (N, C, H, W) float32.  Returns x + BN(depthwise3x3(x)), NCHW."""
    N, C, H, W = x_nchw.shape
    HW = H * W
    HWp = ((HW + 127) // 128) * 128               # lane-dense spatial extent

    # Fuse BN (eval mode) into per-channel scale/bias; fold scale into taps
    # and fold the residual (+1) into the center tap.
    scale = bn_gamma / jnp.sqrt(bn_var + eps)                     # (C,)
    bias = bn_beta - bn_mean * scale                              # (C,)
    taps = w_dw.reshape(C, 9) * scale[:, None]                    # (C, 9)
    taps = taps.at[:, 4].add(1.0)                                 # residual
    params = jnp.concatenate([taps, bias[:, None]], axis=1)       # (C, 10)

    # Precompute the 8 per-tap edge-validity masks (grid-invariant, one
    # sublane-aligned (8, HWp) f32 block).  Output position (r, c) may use
    # input (r+dh, c+dw) iff that neighbor is in-bounds (zero padding).
    pos = jnp.arange(HW, dtype=jnp.int32)
    row, col = pos // W, pos % W
    mask_rows = []
    for dh in (-1, 0, 1):
        for dw in (-1, 0, 1):
            if dh == 0 and dw == 0:
                continue
            ok = ((row + dh >= 0) & (row + dh < H) &
                  (col + dw >= 0) & (col + dw < W))
            mask_rows.append(ok.astype(jnp.float32))
    masks = jnp.stack(mask_rows, axis=0)                          # (8, HW)

    # Free reshape (contiguous dims); pad lanes to a multiple of 128 so the
    # output block stores are unmasked full-width vst.
    x3 = x_nchw.reshape(N, C, HW)
    if HWp != HW:
        x3 = jnp.pad(x3, ((0, 0), (0, 0), (0, HWp - HW)))
        masks = jnp.pad(masks, ((0, 0), (0, HWp - HW)))

    CB = _pick_channel_block(C, HWp, dtype_bytes=x3.dtype.itemsize)

    kernel = functools.partial(_residual_dw_bn_kernel, W=W, HWp=HWp)
    out = pl.pallas_call(
        kernel,
        out_shape=jax.ShapeDtypeStruct((N, C, HWp), x_nchw.dtype),
        grid=(N, C // CB),
        in_specs=[
            pl.BlockSpec((1, CB, HWp), lambda n, c: (n, c, 0)),
            pl.BlockSpec((CB, 10), lambda n, c: (c, 0)),
            pl.BlockSpec((8, HWp), lambda n, c: (0, 0)),
        ],
        out_specs=pl.BlockSpec((1, CB, HWp), lambda n, c: (n, c, 0)),
        compiler_params=pltpu.CompilerParams(
            # Per-channel depthwise conv: both axes independent -> both TCs
            # on v7x can split the (N, C//CB) grid.
            dimension_semantics=("parallel", "parallel")),
    )(x3, params, masks)

    return out[:, :, :HW].reshape(N, C, H, W)


def _reference(x_nchw, w_dw, bn_gamma, bn_beta, bn_mean, bn_var, eps=1e-5):
    """Plain-JAX reference: x + BN(depthwise conv(x)), NCHW in/out."""
    N, C, H, W = x_nchw.shape
    x = jnp.transpose(x_nchw, (0, 2, 3, 1))                       # NHWC
    k = jnp.transpose(w_dw, (1, 2, 0)).reshape(3, 3, 1, C)        # HWIO, I=1
    y = lax.conv_general_dilated(
        x, k, window_strides=(1, 1), padding=((1, 1), (1, 1)),
        dimension_numbers=("NHWC", "HWIO", "NHWC"),
        feature_group_count=C)
    scale = bn_gamma / jnp.sqrt(bn_var + eps)
    bias = bn_beta - bn_mean * scale
    y = y * scale[None, None, None, :] + bias[None, None, None, :]
    out = x + y
    return jnp.transpose(out, (0, 3, 1, 2))


if __name__ == "__main__":
    key = jax.random.PRNGKey(0)
    k_x, k_w, k_g, k_b, k_m, k_v = jax.random.split(key, 6)

    N, C, H, W = 2, 4, 16, 16
    x = jax.random.normal(k_x, (N, C, H, W), dtype=jnp.float32)

    # m = depthwise Conv2d(C, C, 3, padding=1, groups=C) + BatchNorm (eval)
    w_dw = 0.1 * jax.random.normal(k_w, (C, 3, 3), dtype=jnp.float32)
    bn_gamma = 1.0 + 0.1 * jax.random.normal(k_g, (C,), dtype=jnp.float32)
    bn_beta = 0.1 * jax.random.normal(k_b, (C,), dtype=jnp.float32)
    bn_mean = 0.1 * jax.random.normal(k_m, (C,), dtype=jnp.float32)
    bn_var = jnp.abs(jax.random.normal(k_v, (C,), dtype=jnp.float32)) + 0.5

    out = residual_dw_bn(x, w_dw, bn_gamma, bn_beta, bn_mean, bn_var)
    out = jax.block_until_ready(out)

    ref = _reference(x, w_dw, bn_gamma, bn_beta, bn_mean, bn_var)
    assert out.shape == (N, C, H, W)
    assert jnp.allclose(out, ref, atol=1e-4, rtol=1e-4), "mismatch vs reference"

    print("KERNEL_OK")
</pallas_src>

<mosaic_0001>
module attributes {stable_mosaic.version = 11 : i64} {
  func.func @_residual_dw_bn_kernel(%arg0: i32, %arg1: i32, %arg2: memref<1x4x256xf32, #tpu.memory_space<vmem>>, %arg3: memref<4x10xf32, #tpu.memory_space<vmem>>, %arg4: memref<8x256xf32, #tpu.memory_space<vmem>>, %arg5: memref<1x4x256xf32, #tpu.memory_space<vmem>>) attributes {dimension_semantics = [#tpu.dimension_semantics<parallel>, #tpu.dimension_semantics<parallel>], iteration_bounds = array<i64: 2, 1>, scalar_prefetch = 0 : i64, scratch_operands = 0 : i64, tpu.core_type = #tpu.core_type<tc>, window_params = [{transform_indices = @transform_0, window_bounds = array<i64: 1, 4, 256>}, {transform_indices = @transform_1, window_bounds = array<i64: 4, 10>}, {pipeline_mode = #tpu.pipeline_mode<synchronous>, transform_indices = @transform_2, window_bounds = array<i64: 8, 256>}, {transform_indices = @transform_3, window_bounds = array<i64: 1, 4, 256>}]} {
    %c0 = arith.constant 0 : index
    %c0_0 = arith.constant 0 : index
    %c0_1 = arith.constant 0 : index
    %0 = vector.load %arg2[%c0, %c0_0, %c0_1] : memref<1x4x256xf32, #tpu.memory_space<vmem>>, vector<1x4x256xf32>
    %1 = vector.shape_cast %0 : vector<1x4x256xf32> to vector<4x256xf32>
    %c0_2 = arith.constant 0 : index
    %c0_3 = arith.constant 0 : index
    %2 = vector.load %arg3[%c0_2, %c0_3] : memref<4x10xf32, #tpu.memory_space<vmem>>, vector<4x10xf32>
    %c0_4 = arith.constant 0 : index
    %c0_5 = arith.constant 0 : index
    %3 = vector.load %arg4[%c0_4, %c0_5] : memref<8x256xf32, #tpu.memory_space<vmem>>, vector<8x256xf32>
    %4 = vector.extract_strided_slice %2 {offsets = [0, 4], sizes = [4, 1], strides = [1, 1]} : vector<4x10xf32> to vector<4x1xf32>
    %5 = vector.broadcast %4 : vector<4x1xf32> to vector<4x256xf32>
    %6 = arith.mulf %1, %5 : vector<4x256xf32>
    %c17_i32 = arith.constant 17 : i32
    %7 = tpu.dynamic_rotate %1 by %c17_i32 dim 1 : vector<4x256xf32>, i32 -> vector<4x256xf32>
    %8 = vector.extract_strided_slice %3 {offsets = [0, 0], sizes = [1, 256], strides = [1, 1]} : vector<8x256xf32> to vector<1x256xf32>
    %9 = vector.broadcast %8 : vector<1x256xf32> to vector<4x256xf32>
    %10 = arith.mulf %7, %9 : vector<4x256xf32>
    %11 = vector.extract_strided_slice %2 {offsets = [0, 0], sizes = [4, 1], strides = [1, 1]} : vector<4x10xf32> to vector<4x1xf32>
    %12 = vector.broadcast %11 : vector<4x1xf32> to vector<4x256xf32>
    %13 = arith.mulf %10, %12 : vector<4x256xf32>
    %14 = arith.addf %6, %13 : vector<4x256xf32>
    %c16_i32 = arith.constant 16 : i32
    %15 = tpu.dynamic_rotate %1 by %c16_i32 dim 1 : vector<4x256xf32>, i32 -> vector<4x256xf32>
    %16 = vector.extract_strided_slice %3 {offsets = [1, 0], sizes = [1, 256], strides = [1, 1]} : vector<8x256xf32> to vector<1x256xf32>
    %17 = vector.broadcast %16 : vector<1x256xf32> to vector<4x256xf32>
    %18 = arith.mulf %15, %17 : vector<4x256xf32>
    %19 = vector.extract_strided_slice %2 {offsets = [0, 1], sizes = [4, 1], strides = [1, 1]} : vector<4x10xf32> to vector<4x1xf32>
    %20 = vector.broadcast %19 : vector<4x1xf32> to vector<4x256xf32>
    %21 = arith.mulf %18, %20 : vector<4x256xf32>
    %22 = arith.addf %14, %21 : vector<4x256xf32>
    %c15_i32 = arith.constant 15 : i32
    %23 = tpu.dynamic_rotate %1 by %c15_i32 dim 1 : vector<4x256xf32>, i32 -> vector<4x256xf32>
    %24 = vector.extract_strided_slice %3 {offsets = [2, 0], sizes = [1, 256], strides = [1, 1]} : vector<8x256xf32> to vector<1x256xf32>
    %25 = vector.broadcast %24 : vector<1x256xf32> to vector<4x256xf32>
    %26 = arith.mulf %23, %25 : vector<4x256xf32>
    %27 = vector.extract_strided_slice %2 {offsets = [0, 2], sizes = [4, 1], strides = [1, 1]} : vector<4x10xf32> to vector<4x1xf32>
    %28 = vector.broadcast %27 : vector<4x1xf32> to vector<4x256xf32>
    %29 = arith.mulf %26, %28 : vector<4x256xf32>
    %30 = arith.addf %22, %29 : vector<4x256xf32>
    %c1_i32 = arith.constant 1 : i32
    %31 = tpu.dynamic_rotate %1 by %c1_i32 dim 1 : vector<4x256xf32>, i32 -> vector<4x256xf32>
    %32 = vector.extract_strided_slice %3 {offsets = [3, 0], sizes = [1, 256], strides = [1, 1]} : vector<8x256xf32> to vector<1x256xf32>
    %33 = vector.broadcast %32 : vector<1x256xf32> to vector<4x256xf32>
    %34 = arith.mulf %31, %33 : vector<4x256xf32>
    %35 = vector.extract_strided_slice %2 {offsets = [0, 3], sizes = [4, 1], strides = [1, 1]} : vector<4x10xf32> to vector<4x1xf32>
    %36 = vector.broadcast %35 : vector<4x1xf32> to vector<4x256xf32>
    %37 = arith.mulf %34, %36 : vector<4x256xf32>
    %38 = arith.addf %30, %37 : vector<4x256xf32>
    %c255_i32 = arith.constant 255 : i32
    %39 = tpu.dynamic_rotate %1 by %c255_i32 dim 1 : vector<4x256xf32>, i32 -> vector<4x256xf32>
    %40 = vector.extract_strided_slice %3 {offsets = [4, 0], sizes = [1, 256], strides = [1, 1]} : vector<8x256xf32> to vector<1x256xf32>
    %41 = vector.broadcast %40 : vector<1x256xf32> to vector<4x256xf32>
    %42 = arith.mulf %39, %41 : vector<4x256xf32>
    %43 = vector.extract_strided_slice %2 {offsets = [0, 5], sizes = [4, 1], strides = [1, 1]} : vector<4x10xf32> to vector<4x1xf32>
    %44 = vector.broadcast %43 : vector<4x1xf32> to vector<4x256xf32>
    %45 = arith.mulf %42, %44 : vector<4x256xf32>
    %46 = arith.addf %38, %45 : vector<4x256xf32>
    %c241_i32 = arith.constant 241 : i32
    %47 = tpu.dynamic_rotate %1 by %c241_i32 dim 1 : vector<4x256xf32>, i32 -> vector<4x256xf32>
    %48 = vector.extract_strided_slice %3 {offsets = [5, 0], sizes = [1, 256], strides = [1, 1]} : vector<8x256xf32> to vector<1x256xf32>
    %49 = vector.broadcast %48 : vector<1x256xf32> to vector<4x256xf32>
    %50 = arith.mulf %47, %49 : vector<4x256xf32>
    %51 = vector.extract_strided_slice %2 {offsets = [0, 6], sizes = [4, 1], strides = [1, 1]} : vector<4x10xf32> to vector<4x1xf32>
    %52 = vector.broadcast %51 : vector<4x1xf32> to vector<4x256xf32>
    %53 = arith.mulf %50, %52 : vector<4x256xf32>
    %54 = arith.addf %46, %53 : vector<4x256xf32>
    %c240_i32 = arith.constant 240 : i32
    %55 = tpu.dynamic_rotate %1 by %c240_i32 dim 1 : vector<4x256xf32>, i32 -> vector<4x256xf32>
    %56 = vector.extract_strided_slice %3 {offsets = [6, 0], sizes = [1, 256], strides = [1, 1]} : vector<8x256xf32> to vector<1x256xf32>
    %57 = vector.broadcast %56 : vector<1x256xf32> to vector<4x256xf32>
    %58 = arith.mulf %55, %57 : vector<4x256xf32>
    %59 = vector.extract_strided_slice %2 {offsets = [0, 7], sizes = [4, 1], strides = [1, 1]} : vector<4x10xf32> to vector<4x1xf32>
    %60 = vector.broadcast %59 : vector<4x1xf32> to vector<4x256xf32>
    %61 = arith.mulf %58, %60 : vector<4x256xf32>
    %62 = arith.addf %54, %61 : vector<4x256xf32>
    %c239_i32 = arith.constant 239 : i32
    %63 = tpu.dynamic_rotate %1 by %c239_i32 dim 1 : vector<4x256xf32>, i32 -> vector<4x256xf32>
    %64 = vector.extract_strided_slice %3 {offsets = [7, 0], sizes = [1, 256], strides = [1, 1]} : vector<8x256xf32> to vector<1x256xf32>
    %65 = vector.broadcast %64 : vector<1x256xf32> to vector<4x256xf32>
    %66 = arith.mulf %63, %65 : vector<4x256xf32>
    %67 = vector.extract_strided_slice %2 {offsets = [0, 8], sizes = [4, 1], strides = [1, 1]} : vector<4x10xf32> to vector<4x1xf32>
    %68 = vector.broadcast %67 : vector<4x1xf32> to vector<4x256xf32>
    %69 = arith.mulf %66, %68 : vector<4x256xf32>
    %70 = arith.addf %62, %69 : vector<4x256xf32>
    %71 = vector.extract_strided_slice %2 {offsets = [0, 9], sizes = [4, 1], strides = [1, 1]} : vector<4x10xf32> to vector<4x1xf32>
    %72 = vector.broadcast %71 : vector<4x1xf32> to vector<4x256xf32>
    %73 = arith.addf %70, %72 : vector<4x256xf32>
    %c0_6 = arith.constant 0 : index
    %c0_7 = arith.constant 0 : index
    %c0_8 = arith.constant 0 : index
    %74 = vector.load %arg5[%c0_6, %c0_7, %c0_8] : memref<1x4x256xf32, #tpu.memory_space<vmem>>, vector<1x4x256xf32>
    %75 = vector.shape_cast %74 : vector<1x4x256xf32> to vector<4x256xf32>
    %76 = vector.shape_cast %73 : vector<4x256xf32> to vector<1x4x256xf32>
    tpu.vector_store %arg5[%c0_6, %c0_7, %c0_8], %76 {strides = array<i32>} : memref<1x4x256xf32, #tpu.memory_space<vmem>>, vector<1x4x256xf32>,
    return
  }
  func.func @transform_0(%arg0: i32, %arg1: i32) -> (i32, i32, i32) {
    %c0_i32 = arith.constant 0 : i32
    %c0_i32_0 = arith.constant 0 : i32
    return %arg0, %arg1, %c0_i32 : i32, i32, i32
  }
  func.func @transform_1(%arg0: i32, %arg1: i32) -> (i32, i32) {
    %c0_i32 = arith.constant 0 : i32
    %c0_i32_0 = arith.constant 0 : i32
    return %arg1, %c0_i32 : i32, i32
  }
  func.func @transform_2(%arg0: i32, %arg1: i32) -> (i32, i32) {
    %c0_i32 = arith.constant 0 : i32
    %c0_i32_0 = arith.constant 0 : i32
    %c0_i32_1 = arith.constant 0 : i32
    return %c0_i32, %c0_i32_0 : i32, i32
  }
  func.func @transform_3(%arg0: i32, %arg1: i32) -> (i32, i32, i32) {
    %c0_i32 = arith.constant 0 : i32
    %c0_i32_0 = arith.constant 0 : i32
    return %arg0, %arg1, %c0_i32 : i32, i32, i32
  }
}

</mosaic_0001>

<bundles_post_ra>
// kernel: tpu_custom_call.1
= control target key start
LH: loop header
LB: loop body
LE: loop exit
PB: predicated region body
PF: predicated region fallthrough
CT: control target
= control target key end

     0   :  { %8 = vsyncpa [#allocation3], 0  ;;  %s1241_s0 = inlined_call_operand.hbm [shape: f32[2,4,256], index: 0, kind: input, shape index: {}]   ;;  %s1242_s1 = inlined_call_operand.hbm [shape: f32[4,10], index: 1, kind: input, shape index: {}]   ;;  %s1243_s2 = inlined_call_operand.hbm [shape: f32[8,256], index: 2, kind: input, shape index: {}]   ;;  %s1244_s3 = inlined_call_operand.hbm [shape: f32[2,4,256], index: 3, kind: output, shape index: {}]  }
   0x1   :  { %10 = vsyncpa [#allocation3 + $0x1], 0 }
   0x2   :  { %11 = vsyncpa [#allocation6], 0 }
   0x3   :  { %12 = vsyncpa [#allocation4], 0 }
   0x4   :  { %14 = vsyncpa [#allocation4 + $0x1], 0  ;;  %s971_s12 = smov 0   ;;  %s973_s13 = smov 0  }
   0x5   :  { %s975_s14 = smov 0   ;;  %s977_s15 = smov 0  }
   0x6   :  { %s979_s16 = smov 0   ;;  %s981_s17 = smov 0  }
   0x7 LB: > { %s619_s18 = sadd.s32 4294967295, %s928_s17   ;;  %s620_s19 = sadd.s32 4294967294, %s928_s17   ;;  %s928_s17 = sphi %s981_s17, %s20_s17   ;;  %s924_s16 = sphi %s979_s16, %s1254_s16   ;;  %s920_s15 = sphi %s977_s15, %s1253_s15   ;;  %s916_s14 = sphi %s975_s14, %s1252_s14   ;;  %s912_s13 = sphi %s973_s13, %s1251_s13   ;;  %s908_s12 = sphi %s971_s12, %s1250_s12  }
   0x8   : > { %p54_p0 = scmp.ne.s32.totalorder %s912_s13, %s908_s12  ;;  %p1005_p1 = scmp.eq.s32.totalorder %s619_s18, 0 }
   0x9   : > { %p133_p2 = scmp.eq.s32.totalorder %s620_s19, 1  ;;  %p621_p4 = scmp.ge.s32.totalorder %s928_s17, 1 }
   0xa   : > { %p1011_p3 = por %p1005_p1, %p54_p0  ;;  %p140_p6 = scmp.lt.s32.totalorder %s928_s17, 3 }
   0xb   : > { %p1016_p5 = por %p133_p2, %p54_p0  ;;  %s154_s25 = sshll.u32 %s1242_s1, 4  ;;  %s155_s25 = int_to_ptr.hbm [resolvable:$true] %s154_s25 }
   0xc   : > { %p1024_p7 = pnand %p621_p4, %p140_p6  ;;  %p624_p8 = scmp.ge.s32.totalorder %s928_s17, 2 }
   0xd   : > { %s930_s27 = smov [#allocation5]   ;;  %s166_s4 = sshll.u32 %s1243_s2, 4  ;;  %s167_s4 = int_to_ptr.hbm [resolvable:$true] %s166_s4 }
   0xe   : > { %p652_p9 = pneg %p1024_p7  ;;  %s156_s28 = sshll.u32 %s930_s27, 4  ;;  %s157_s28 = int_to_ptr.vmem [resolvable:$true] %s156_s28 }
   0xf   : > { %s931_s5 = smov [#allocation7]   ;;  %p127_p11 = scmp.eq.s32.totalorder %s619_s18, 1 }
  0x10   : > { %p653_p10 = pnand %p652_p9, %p1005_p1  ;;  %s168_s6 = sshll.u32 %s931_s5, 4  ;;  %s169_s6 = int_to_ptr.vmem [resolvable:$true] %s168_s6 }
  0x11   : > { %s32_s7 = sadd.s32 1, %s924_s16  ;;  %s41_s8 = sadd.s32 1, %s916_s14 }
  0x12   : > { %655 = dma.hbm_to_vmem [thread:$0]  (!%p653_p10), %s155_s25, 64, %s157_s28, [#allocation6]  }
  0x13   : > { %658 = dma.hbm_to_vmem [thread:$0]  (!%p653_p10), %s167_s4, 256, %s169_s6, [#allocation6]  }
  0x14   : > { %p34_p12 = scmp.ge.s32.totalorder %s32_s7, 2  ;;  %p48_p13 = scmp.ne.s32.totalorder %s916_s14, %s912_s13 }
  0x15   : > { %p49_p0 = scmp.eq.s32.totalorder %s928_s17, 0  ;;  %p669_p4 = scmp.lt.s32.totalorder %s928_s17, 2 }
  0x16   : > { %s1256_s7 = smov (%p34_p12, %s32_s7), 0  ;;  %p1043_p2 = por %p127_p11, %p48_p13 }
  0x17   : > { %s36_s10 = ssub.s32 %s924_s16, %s1256_s7  ;;  %s179_s11 = sand.u32 1, %s916_s14  }
  0x18   : > { %p39_p6 = scmp.eq.s32.totalorder %s36_s10, 0  ;;  %p50_p9 = por %p49_p0, %p48_p13 }
  0x19   : > { %s625_s19 = sshll.u32 %s179_s11, 3  ;;  %s638_s18 = sshll.u32 %s924_s16, 3 }
  0x1a   : > { %s1053_s23 = scalar_select %p39_p6, %s916_s14, %s41_s8  }
  0x1b   : > { %s190_s27 = scalar_lea.hbm %s1241_s0, %s638_s18  ;;  %s183_s29 = scalar_lea.vmem [#allocation2], %s625_s19 }
  0x1c   : > { %s192_s28 = sshll.u32 %s190_s27, 4  ;;  %s194_s30 = sshll.u32 %s183_s29, 4  ;;  %s193_s28 = int_to_ptr.hbm [resolvable:$true] %s192_s28  ;;  %s195_s30 = int_to_ptr.vmem [resolvable:$true] %s194_s30 }
  0x1d   : > { %p660_p10 = pnand %p669_p4, %p50_p9  ;;  %s180_s4 = scalar_lea.sflag [#allocation3], %s179_s11 }
  0x1e   : > { %203 = sbr.rel (%p1024_p7) target bundleno = 234 (0xea), region = 32  ;;  %s1063_s5 = sand.u32 (!%p1024_p7), 1, %s912_s13  }
  0x1f   : > { %662 = dma.hbm_to_vmem [thread:$0]  (!%p660_p10), %s193_s28, 128, %s195_s30, %s180_s4  }
  0x20   : > { %s629_s6 = sshll.u32 (!%p1024_p7), %s1063_s5, 3  ;;  %s206_s8 = scalar_lea.sflag (!%p1024_p7), [#allocation3], %s1063_s5 }
  0x21   : > { %s209_s10 = scalar_lea.vmem (!%p1024_p7), [#allocation2], %s629_s6 }
  0x23   : > { %895 = dma.done.wait (%p1011_p3), %s206_s8, 128  }
  0x24   : > { %897 = vsyncadd (%p1011_p3), %s206_s8, 4294967168 }
  0x25   : > { %899 = dma.done.wait (%p1005_p1), [#allocation6], 320  }
  0x26   : > { %901 = vsyncadd (%p1005_p1), [#allocation6], 4294966976  ;;  %v932_v0 = vmov 0   ;;  %v933_v1 = vmov 4   ;;  %v1077_v2 = vld [vmem:[#allocation5] sm:$0xf]  ;;  %v267_v40 = vlaneseq }
  0x27   : > { %743 = vset.pattern.permute.xlu1 %v932_v0  ;;  %742 = vset.pattern.permute.xlu0 %v933_v1  ;;  %v1079_v3 = vld [vmem:[%s209_s10] sm:$0xff]  ;;  %v934_v6 = vmov 2   ;;  %s935_s20 = smov 17   ;;  %v936_v7 = vmov 1   ;;  %s937_s21 = smov 16   ;;  %v938_v10 = vmov 3  }
  0x28   : > { %277 = vperm.xlu1 %743, %v1077_v2   ;;  %249 = vperm.xlu0 %742, %v1077_v2   ;;  %258 = vst [vmem:[#allocation1] ss:$2 sm:$0xff] %v1079_v3  ;;  %v939_v13 = vmov 5   ;;  %s940_s26 = smov 1   ;;  %s941_s11 = smov 15   ;;  %v942_v16 = vmov 6  }
  0x29   : > { %s943_s19 = smov 127   ;;  %v944_v19 = vmov 8   ;;  %s945_s18 = smov 113   ;;  %v946_v22 = vmov 7   ;;  %v947_v25 = vmov 9   ;;  %v1109_v41 = vand.u32 127, %v267_v40 }
  0x2a   : > { %750 = vset.pattern.permute.xlu2 %v944_v19  ;;  %s948_s24 = smov 112   ;;  %s949_s25 = smov 111   ;;  %v1112_v44 = vld [vmem:[#allocation7 + $0x8] sm:$0xff]  ;;  %v950_v48 = vmov 839922192   ;;  %v1120_v51 = vld [vmem:[#allocation7] sm:$0xff] }
  0x2b   : > { %vm269_vm0 = vcmp.lt.s32.totalorder %v1109_v41, 17  ;;  %v273_v46 = vperm.slane %v1112_v44, 0  ;;  %v1117_v49 = vunpack.c.l.s4 %v950_v48  ;;  %vm326_vm1 = vcmp.lt.s32.totalorder %v1109_v41, 15  ;;  %s639_s27 = sshll.u32 %s920_s15, 3  ;;  %s242_s4 = scalar_lea.vmem [#allocation8], %s629_s6 }
  0x2c   : > { %vm298_vm2 = vcmp.lt.s32.totalorder %v1109_v41, 16  ;;  %v272_v53 = vperm.slane %v1120_v51, 0  ;;  %v330_v54 = vperm.slane %v1112_v44, 2  ;;  %v302_v59 = vperm.slane %v1112_v44, 1  ;;  %s509_s30 = scalar_lea.hbm %s1244_s3, %s639_s27  ;;  %s511_s8 = sshll.u32 %s242_s4, 4  ;;  %s512_s8 = int_to_ptr.vmem [resolvable:$true] %s511_s8 }
  0x2d   : > { %v253_v55 = vunpack.c.0.s8 %v1117_v49  ;;  %v301_v63 = vperm.slane %v1120_v51, 1  ;;  %vm354_vm3 = vcmp.lt.s32.totalorder %v1109_v41, 1  ;;  %vm410_vm4 = vcmp.lt.s32.totalorder %v1109_v41, 113  ;;  %s513_s15 = sshll.u32 %s509_s30, 4  ;;  %s496_s10 = scalar_lea.sflag [#allocation4], %s1063_s5  ;;  %s514_s15 = int_to_ptr.hbm [resolvable:$true] %s513_s15 }
  0x2e   : > { %vm382_vm5 = vcmp.lt.s32.totalorder %v1109_v41, 127  ;;  %vm285_vm6 = vcmask 1043456   ;;  %vm438_vm7 = vcmp.lt.s32.totalorder %v1109_v41, 112  ;;  %vm466_vm8 = vcmp.lt.s32.totalorder %v1109_v41, 111 }
  0x2f   : > { %v259_v4 = vld.sshfl [vmem:[#allocation1] sm:$0xff pattern:$0x75316420]  ;;  %v260_v5 = vld.sshfl [vmem:[#allocation1 + $0x8] sm:$0xff pattern:$0x75316420] }
  0x30   : > { %745 = vset.pattern.permute.xlu1 %v934_v6  ;;  %263 = vrot.lane.b32.xlu0 %v259_v4, %s935_s20  ;;  %289 = vst [vmem:[#allocation1] ss:$2 sm:$0xff] %v1079_v3  ;;  %v358_v4 = vperm.slane %v1112_v44, 3 }
  0x31   : > { %334 = vperm.xlu1 %745, %v1077_v2   ;;  %744 = vset.pattern.permute.xlu0 %v936_v7 }
  0x37   : > { %v290_v8 = vld.sshfl [vmem:[#allocation1] sm:$0xff pattern:$0x75316420]  ;;  %v291_v9 = vld.sshfl [vmem:[#allocation1 + $0x8] sm:$0xff pattern:$0x75316420] }
  0x38   : > { %306 = vperm.xlu0 %744, %v1077_v2   ;;  %294 = vrot.lane.b32.xlu2 %v290_v8, %s937_s21  ;;  %317 = vst [vmem:[#allocation1] ss:$2 sm:$0xff] %v1079_v3 }
  0x39   : > { %265 = vrot.lane.b32.xlu1 %v260_v5, %s935_s20  ;;  %v329_v5 = vperm.slane %v1120_v51, 2  ;;  %s856_s20 = sshra.s32 %s514_s15, 4  ;;  %s857_s20 = int_to_ptr.hbm [resolvable:$true] %s856_s20 }
  0x3a   : > { %746 = vset.pattern.permute.xlu1 %v938_v10  ;;  %p863_p11 = scmp.lt.s32.totalorder %s857_s20, %s1244_s3 }
  0x3f   : > { %v318_v11 = vld.sshfl [vmem:[#allocation1] sm:$0xff pattern:$0x75316420]  ;;  %v319_v12 = vld.sshfl [vmem:[#allocation1 + $0x8] sm:$0xff pattern:$0x75316420] }
  0x40   : > { %296 = vrot.lane.b32.xlu2 %v291_v9, %s937_s21  ;;  %345 = vst [vmem:[#allocation1] ss:$2 sm:$0xff] %v1079_v3  ;;  %747 = vset.pattern.permute.xlu0 %v939_v13  ;;  %s858_s21 = scalar_lea.hbm %s857_s20, 8 }
  0x41   : > { %362 = vperm.xlu1 %746, %v1077_v2   ;;  %p859_p1 = scmp.ne.s32.totalorder %s857_s20, %s858_s21 }
  0x43   : > { %p860_p3 = pnand %p859_p1, %p1043_p2 }
  0x45   : > { %p861_p7 = pneg %p860_p3 }
  0x47   : > { %v346_v14 = vld.sshfl [vmem:[#allocation1] sm:$0xff pattern:$0x75316420]  ;;  %v347_v15 = vld.sshfl [vmem:[#allocation1 + $0x8] sm:$0xff pattern:$0x75316420] }
  0x48   : > { %352 = vrot.lane.b32.xlu0 %v347_v15, %s940_s26  ;;  %373 = vst [vmem:[#allocation1] ss:$2 sm:$0xff] %v1079_v3  ;;  %324 = vrot.lane.b32.xlu2 %v319_v12, %s941_s11  ;;  %v414_v12 = vperm.slane %v1112_v44, 5 }
  0x49   : > { %322 = vrot.lane.b32.xlu1 %v318_v11, %s941_s11  ;;  %v386_v11 = vperm.slane %v1112_v44, 4  ;;  %s862_s11 = scalar_lea.hbm %s1244_s3, 16 }
  0x4a   : > { %748 = vset.pattern.permute.xlu1 %v942_v16  ;;  %p864_p12 = scmp.lt.s32.totalorder %s862_s11, %s858_s21 }
  0x4c   : > { %p865_p13 = por %p864_p12, %p863_p11 }
  0x4e   : > { %p866_p0 = pnand %p865_p13, %p861_p7 }
  0x4f   : > { %v375_v17 = vld.sshfl [vmem:[#allocation1 + $0x8] sm:$0xff pattern:$0x75316420]  ;;  %v374_v18 = vld.sshfl [vmem:[#allocation1] sm:$0xff pattern:$0x75316420] }
  0x50   : > { %380 = vrot.lane.b32.xlu0 %v375_v17, %s943_s19  ;;  %401 = vst [vmem:[#allocation1] ss:$2 sm:$0xff] %v1079_v3  ;;  %350 = vrot.lane.b32.xlu2 %v346_v14, %s940_s26 }
  0x51   : > { %418 = vperm.xlu1 %748, %v1077_v2  }
  0x57   : > { %v402_v20 = vld.sshfl [vmem:[#allocation1] sm:$0xff pattern:$0x75316420]  ;;  %v403_v21 = vld.sshfl [vmem:[#allocation1 + $0x8] sm:$0xff pattern:$0x75316420] }
  0x58   : > { %390 = vperm.xlu0 %747, %v1077_v2   ;;  %429 = vst [vmem:[#allocation1] ss:$2 sm:$0xff] %v1079_v3  ;;  %378 = vrot.lane.b32.xlu2 %v374_v18, %s943_s19 }
  0x59   : > { %406 = vrot.lane.b32.xlu1 %v402_v20, %s945_s18 }
  0x5a   : > { %749 = vset.pattern.permute.xlu1 %v946_v22 }
  0x5f   : > { %v431_v23 = vld.sshfl [vmem:[#allocation1 + $0x8] sm:$0xff pattern:$0x75316420]  ;;  %v430_v24 = vld.sshfl [vmem:[#allocation1] sm:$0xff pattern:$0x75316420] }
  0x60   : > { %457 = vst [vmem:[#allocation1] ss:$2 sm:$0xff] %v1079_v3  ;;  %408 = vrot.lane.b32.xlu2 %v403_v21, %s945_s18  ;;  %751 = vset.pattern.permute.xlu0 %v947_v25 }
  0x61   : > { %434 = vrot.lane.b32.xlu1 %v430_v24, %s948_s24  ;;  %v357_v24 = vperm.slane %v1120_v51, 3 }
  0x67   : > { %v459_v26 = vld.sshfl [vmem:[#allocation1 + $0x8] sm:$0xff pattern:$0x75316420]  ;;  %v458_v27 = vld.sshfl [vmem:[#allocation1] sm:$0xff pattern:$0x75316420] }
  0x68   : > { %464 = vrot.lane.b32.xlu0 %v459_v26, %s949_s25  ;;  %436 = vrot.lane.b32.xlu2 %v431_v23, %s948_s24 }
  0x69   : > { %446 = vperm.xlu1 %749, %v1077_v2  }
  0x70   : > { %486 = vperm.xlu0 %751, %v1077_v2   ;;  %462 = vrot.lane.b32.xlu2 %v458_v27, %s949_s25 }
  0x78   : > { %474 = vperm.xlu2 %750, %v1077_v2  }
  0x92   : > { %v295_v28 = vpop.permute.xlu2 %294 }
  0x9a   : > { %v278_v29 = vpop.permute.xlu1 %277  ;;  %v297_v30 = vpop.permute.xlu2 %296 }
  0x9b   : > { %v250_v31 = vpop.permute.xlu0 %249  ;;  %v299_v61 = vsel %vm298_vm2, %v295_v28, %v297_v30  ;;  %v300_v6 = vsel %vm298_vm2, %v297_v30, %v295_v28 }
  0x9c   : > { %v254_v2 = vperm.slane %v250_v31, %v253_v55  ;;  %v304_v7 = vmul.f32 %v302_v59, %v299_v61  ;;  %v303_v23 = vmul.f32 %v301_v63, %v300_v6 }
  0x9e   : > { %v256_v22 = vmul.f32 %v254_v2, %v1079_v3  ;;  %v470_v2 = vperm.slane %v1112_v44, 7 }
  0xa2   : > { %v325_v33 = vpop.permute.xlu2 %324 }
  0xa3   : > { %v1099_v32 = vpop.permute.xlu1 %334  ;;  %v264_v34 = vpop.permute.xlu0 %263 }
  0xaa   : > { %v1101_v36 = vpop.permute.xlu2 %350 }
  0xab   : > { %v266_v35 = vpop.permute.xlu1 %265  ;;  %v1103_v37 = vpop.permute.xlu0 %306 }
  0xac   : > { %v270_v47 = vsel %vm269_vm0, %v264_v34, %v266_v35  ;;  %v271_v56 = vsel %vm269_vm0, %v266_v35, %v264_v34  ;;  %v310_v14 = vmul.f32 %v1103_v37, %v304_v7  ;;  %v309_v31 = vmul.f32 %v1103_v37, %v303_v23 }
  0xad   : > { %v275_v50 = vmul.f32 %v273_v46, %v270_v47  ;;  %v274_v0 = vmul.f32 %v272_v53, %v271_v56  ;;  %v413_v35 = vperm.slane %v1120_v51, 5  ;;  %v441_v56 = vperm.slane %v1120_v51, 6 }
  0xae   : > { %v313_v27 = vrot.slane %v310_v14, 4 }
  0xaf   : > { %v281_v60 = vmul.f32 %v278_v29, %v275_v50  ;;  %v280_v15 = vmul.f32 %v278_v29, %v274_v0  ;;  %v385_v29 = vperm.slane %v1120_v51, 4 }
  0xb1   : > { %v284_v8 = vrot.slane %v281_v60, 4  ;;  %v442_v60 = vperm.slane %v1112_v44, 6 }
  0xb2   : > { %v1107_v39 = vpop.permute.xlu2 %378 }
  0xb3   : > { %v1105_v38 = vpop.permute.xlu1 %362  ;;  %v286_v19 = vsel %vm285_vm6, %v280_v15, %v284_v8 }
  0xba   : > { %v353_v42 = vpop.permute.xlu0 %352  ;;  %v1114_v45 = vpop.permute.xlu2 %408 }
  0xbb   : > { %v323_v43 = vpop.permute.xlu1 %322  ;;  %v355_v9 = vsel %vm354_vm3, %v1101_v36, %v353_v42  ;;  %v356_v34 = vsel %vm354_vm3, %v353_v42, %v1101_v36  ;;  %v314_v36 = vsel %vm285_vm6, %v309_v31, %v313_v27 }
  0xbc   : > { %v327_v57 = vsel %vm326_vm1, %v323_v43, %v325_v33  ;;  %v328_v10 = vsel %vm326_vm1, %v325_v33, %v323_v43  ;;  %v360_v20 = vmul.f32 %v358_v4, %v355_v9  ;;  %v288_v33 = vadd.f32 %v286_v19, %v256_v22 }
  0xbd   : > { %v332_v1 = vmul.f32 %v330_v54, %v327_v57  ;;  %v331_v21 = vmul.f32 %v329_v5, %v328_v10  ;;  %v359_v42 = vmul.f32 %v357_v24, %v356_v34 }
  0xbe   : > { %v366_v40 = vmul.f32 %v1105_v38, %v360_v20 }
  0xbf   : > { %v338_v16 = vmul.f32 %v1099_v32, %v332_v1  ;;  %v337_v43 = vmul.f32 %v1099_v32, %v331_v21  ;;  %v316_v32 = vadd.f32 %v314_v36, %v288_v33  ;;  %v365_v63 = vmul.f32 %v1105_v38, %v359_v42 }
  0xc0   : > { %v369_v57 = vrot.slane %v366_v40, 4  ;;  %v469_v1 = vperm.slane %v1120_v51, 7 }
  0xc1   : > { %v341_v28 = vrot.slane %v338_v16, 4 }
  0xc2   : > { %v381_v58 = vpop.permute.xlu0 %380  ;;  %v1133_v62 = vpop.permute.xlu2 %436  ;;  %v370_v6 = vsel %vm285_vm6, %v365_v63, %v369_v57 }
  0xc3   : > { %v1122_v52 = vpop.permute.xlu1 %418  ;;  %v384_v18 = vsel %vm382_vm5, %v381_v58, %v1107_v39  ;;  %v383_v37 = vsel %vm382_vm5, %v1107_v39, %v381_v58  ;;  %v342_v53 = vsel %vm285_vm6, %v337_v43, %v341_v28 }
  0xc4   : > { %v388_v30 = vmul.f32 %v386_v11, %v384_v18  ;;  %v344_v39 = vadd.f32 %v342_v53, %v316_v32 }
  0xc6   : > { %v372_v10 = vadd.f32 %v370_v6, %v344_v39 }
  0xca   : > { %v391_v25 = vpop.permute.xlu0 %390  ;;  %v463_v3 = vpop.permute.xlu2 %462 }
  0xcb   : > { %v407_v13 = vpop.permute.xlu1 %406  ;;  %v394_v46 = vmul.f32 %v391_v25, %v388_v30 }
  0xcc   : > { %v412_v17 = vsel %vm410_vm4, %v1114_v45, %v407_v13  ;;  %v411_v47 = vsel %vm410_vm4, %v407_v13, %v1114_v45  ;;  %v387_v45 = vmul.f32 %v385_v29, %v383_v37 }
  0xcd   : > { %v416_v26 = vmul.f32 %v414_v12, %v412_v17  ;;  %v415_v54 = vmul.f32 %v413_v35, %v411_v47  ;;  %v397_v59 = vrot.slane %v394_v46, 4 }
  0xce   : > { %v393_v0 = vmul.f32 %v391_v25, %v387_v45 }
  0xcf   : > { %v422_v48 = vmul.f32 %v1122_v52, %v416_v26  ;;  %v421_v4 = vmul.f32 %v1122_v52, %v415_v54 }
  0xd0   : > { %v398_v7 = vsel %vm285_vm6, %v393_v0, %v397_v59 }
  0xd1   : > { %v425_v58 = vrot.slane %v422_v48, 4 }
  0xd2   : > { %v475_v44 = vpop.permute.xlu2 %474 }
  0xd3   : > { %v435_v50 = vpop.permute.xlu1 %434  ;;  %v426_v51 = vsel %vm285_vm6, %v421_v4, %v425_v58 }
  0xd4   : > { %v440_v61 = vsel %vm438_vm7, %v1133_v62, %v435_v50  ;;  %v439_v5 = vsel %vm438_vm7, %v435_v50, %v1133_v62  ;;  %v400_v62 = vadd.f32 %v398_v7, %v372_v10 }
  0xd5   : > { %v444_v9 = vmul.f32 %v442_v60, %v440_v61  ;;  %v443_v52 = vmul.f32 %v441_v56, %v439_v5 }
  0xd6   : > { %v428_v18 = vadd.f32 %v426_v51, %v400_v62 }
  0xda   : > { %v465_v8 = vpop.permute.xlu0 %464 }
  0xdb   : > { %v467_v38 = vsel %vm466_vm8, %v463_v3, %v465_v8  ;;  %v468_v11 = vsel %vm466_vm8, %v465_v8, %v463_v3  ;;  %v447_v12 = vpop.permute.xlu1 %446 }
  0xdc   : > { %v450_v13 = vmul.f32 %v447_v12, %v444_v9  ;;  %v471_v14 = vmul.f32 %v469_v1, %v467_v38  ;;  %v472_v41 = vmul.f32 %v470_v2, %v468_v11  ;;  %v449_v15 = vmul.f32 %v447_v12, %v443_v52 }
  0xde   : > { %v453_v16 = vrot.slane %v450_v13, 4  ;;  %v478_v17 = vmul.f32 %v475_v44, %v472_v41  ;;  %v477_v20 = vmul.f32 %v475_v44, %v471_v14 }
  0xe0   : > { %v454_v19 = vsel %vm285_vm6, %v449_v15, %v453_v16  ;;  %v481_v21 = vrot.slane %v478_v17, 4 }
  0xe1   : > { %v456_v22 = vadd.f32 %v454_v19, %v428_v18 }
  0xe2   : > { %v482_v23 = vsel %vm285_vm6, %v477_v20, %v481_v21  ;;  %v487_v24 = vpop.permute.xlu0 %486 }
  0xe3   : > { %v484_v25 = vadd.f32 %v482_v23, %v456_v22  ;;  %v491_v26 = vperm.slane %v487_v24, %v253_v55 }
  0xe5   : > { %v493_v27 = vadd.f32 %v491_v26, %v484_v25 }
  0xe7   : > { %494 = vst [vmem:[%s242_s4] sm:$0xff] %v493_v27 }
  0xe8   : > { %869 = shalt.err (!%p866_p0)
}
  0xe9   : > { %650 = dma.vmem_to_hbm [thread:$0]  (%p1043_p2), %s512_s8, 128, %s514_s15, %s496_s10  }
  0xea PF: > { %s525_s5 = sand.u32 1, %s908_s12   ;;  %p664_p4 = pnand %p624_p8, %p1016_p5 }
  0xeb   : > { %s526_s24 = scalar_lea.sflag [#allocation4], %s525_s5 }
  0xec   : > { %p665_p6 = pneg %p664_p4 }
  0xee   : > { %903 = dma.done.wait (%p665_p6), %s526_s24, 128  }
  0xef   : > { %905 = vsyncadd (%p665_p6), %s526_s24, 4294967168  ;;  %s20_s17 = sadd.s32 1, %s928_s17   ;;  %s1250_s12 = smov %s912_s13 }
  0xf0   : > { %p17_p9 = scmp.ge.s32.totalorder %s20_s17, 4   ;;  %s1251_s13 = smov %s916_s14 }
  0xf1   : > { %s1252_s14 = smov %s1053_s23  ;;  %s1253_s15 = smov %s924_s16 }
  0xf2   : > { %s1254_s16 = smov %s1256_s7  ;;  %19 = sbr.rel (!%p17_p9) target bundleno = 7 (0x7), region = 86 }
  0xf7   :  { %532 = vsyncpa [#allocation3], 1 }
  0xf8   :  { %534 = vsyncpa [#allocation3 + $0x1], 1 }
  0xf9   :  { %535 = vsyncpa [#allocation6], 1 }
  0xfa   :  { %536 = vsyncpa [#allocation4], 1 }
  0xfb   :  { %538 = vsyncpa [#allocation4 + $0x1], 1 }

</bundles_post_ra>
